<compile_context>
chip_gen: v5e
topology: v5e:2x2
jax: 0.10.0
libtpu: 0.0.40
codegen_flags: <defaults>
</compile_context>

<pallas_src>
import functools

import jax
import jax.numpy as jnp
from jax.experimental import pallas as pl
from jax.experimental.pallas import tpu as pltpu

LATENT_DIM = 20
HIDDEN_DIMS = [256, 128]            # PyTorch iterates reversed(hidden_dims) -> 128, 256
OUTPUT_DIM = 784                    # 28*28 MNIST reconstruction
MAX_TILE_B = 1024                   # max batch tile (multiple of 8)


def _round_up(x, m):
    return ((x + m - 1) // m) * m


def decoder_kernel(z_ref, w1_ref, b1_ref, w2_ref, b2_ref, w3_ref, b3_ref, out_ref):
    # Layer 1: Linear(20 -> 128) + ReLU. bf16 MXU inputs, f32 accumulate, f32 epilogue.
    z = z_ref[...].astype(jnp.bfloat16)
    h1 = jnp.dot(z, w1_ref[...], preferred_element_type=jnp.float32)
    h1 = jnp.maximum(h1 + b1_ref[...], 0.0)

    # Layer 2: Linear(128 -> 256) + ReLU.
    h2 = jnp.dot(h1.astype(jnp.bfloat16), w2_ref[...],
                 preferred_element_type=jnp.float32)
    h2 = jnp.maximum(h2 + b2_ref[...], 0.0)

    # Layer 3: Linear(256 -> 784) + Sigmoid.
    logits = jnp.dot(h2.astype(jnp.bfloat16), w3_ref[...],
                     preferred_element_type=jnp.float32)
    logits = logits + b3_ref[...]
    # sigmoid(x) == 0.5 * tanh(0.5 * x) + 0.5  -> single EUP tanh, no divide.
    out_ref[...] = (0.5 * jnp.tanh(0.5 * logits) + 0.5).astype(out_ref.dtype)


@functools.partial(jax.jit, static_argnames=("max_tile_b",))
def decoder_forward(z, params, *, max_tile_b=MAX_TILE_B):
    w1, b1, w2, b2, w3, b3 = params
    B = z.shape[0]

    # Batch tile: as large as possible (amortize per-step overhead), but capped
    # at ~half the batch so there are >= 2 grid steps for v7x megacore sharding.
    tile_b = min(max_tile_b, max(8, _round_up(pl.cdiv(B, 2), 8)))
    Bp = _round_up(B, tile_b)
    if Bp != B:
        z = jnp.pad(z, ((0, Bp - B), (0, 0)))
    n_tiles = Bp // tile_b

    grid_spec = pltpu.PrefetchScalarGridSpec(
        num_scalar_prefetch=0,
        grid=(n_tiles,),
        in_specs=[
            # Batch-tiled latent input.
            pl.BlockSpec((tile_b, LATENT_DIM), lambda i: (i, 0)),
            # Weights / biases: constant block index -> stay resident in VMEM.
            pl.BlockSpec(w1.shape, lambda i: (0, 0)),
            pl.BlockSpec(b1.shape, lambda i: (0, 0)),
            pl.BlockSpec(w2.shape, lambda i: (0, 0)),
            pl.BlockSpec(b2.shape, lambda i: (0, 0)),
            pl.BlockSpec(w3.shape, lambda i: (0, 0)),
            pl.BlockSpec(b3.shape, lambda i: (0, 0)),
        ],
        # Exactly 784 output columns -> no wrapper-side lane slice.
        out_specs=pl.BlockSpec((tile_b, OUTPUT_DIM), lambda i: (i, 0)),
    )

    weight_bytes = sum(int(p.size) * p.dtype.itemsize
                       for p in (w1, b1, w2, b2, w3, b3))
    flops = 2 * Bp * (LATENT_DIM * 128 + 128 * 256 + 256 * OUTPUT_DIM)

    out = pl.pallas_call(
        decoder_kernel,
        out_shape=jax.ShapeDtypeStruct((Bp, OUTPUT_DIM), jnp.float32),
        grid_spec=grid_spec,
        compiler_params=pltpu.CompilerParams(
            dimension_semantics=("parallel",),
        ),
        cost_estimate=pl.CostEstimate(
            flops=flops,
            transcendentals=Bp * OUTPUT_DIM,
            bytes_accessed=weight_bytes
            + Bp * LATENT_DIM * 4
            + Bp * OUTPUT_DIM * 4,
        ),
    )(z, w1, b1, w2, b2, w3, b3)

    # Only the (rare) batch padding is sliced off; the lane dimension is exact.
    if Bp != B:
        out = out[:B]
    return out


def init_decoder_params(key, latent_dim, hidden_dims, output_dim):
    """Init mimicking PyTorch nn.Linear default (U[-1/sqrt(fan_in), +1/sqrt(fan_in)]).

    Weights are stored [in_features, out_features] in bf16; biases as (1, out) f32.
    """
    dims_in = [latent_dim] + list(reversed(hidden_dims))      # [20, 128, 256]
    dims_out = list(reversed(hidden_dims)) + [output_dim]     # [128, 256, 784]
    params = []
    for d_in, d_out in zip(dims_in, dims_out):
        key, kw, kb = jax.random.split(key, 3)
        bound = 1.0 / jnp.sqrt(jnp.float32(d_in))
        w = jax.random.uniform(kw, (d_in, d_out), jnp.float32, -bound, bound)
        b = jax.random.uniform(kb, (1, d_out), jnp.float32, -bound, bound)
        params.extend([w.astype(jnp.bfloat16), b])
    return tuple(params)


def reference_forward(z, params):
    """Pure-JAX reference with identical bf16-input / f32-accumulate matmuls."""
    w1, b1, w2, b2, w3, b3 = params
    h1 = jnp.dot(z.astype(jnp.bfloat16), w1, preferred_element_type=jnp.float32)
    h1 = jnp.maximum(h1 + b1, 0.0)
    h2 = jnp.dot(h1.astype(jnp.bfloat16), w2, preferred_element_type=jnp.float32)
    h2 = jnp.maximum(h2 + b2, 0.0)
    logits = jnp.dot(h2.astype(jnp.bfloat16), w3, preferred_element_type=jnp.float32)
    logits = logits + b3
    return jax.nn.sigmoid(logits)


if __name__ == "__main__":
    key = jax.random.PRNGKey(0)
    k_params, k_z = jax.random.split(key)

    params = init_decoder_params(k_params, LATENT_DIM, HIDDEN_DIMS, OUTPUT_DIM)

    B = 8
    z = jax.random.normal(k_z, (B, LATENT_DIM), jnp.float32)

    out = jax.block_until_ready(decoder_forward(z, params))
    ref = jax.block_until_ready(reference_forward(z, params))

    assert out.shape == (B, OUTPUT_DIM), out.shape
    assert bool(jnp.all(jnp.isfinite(out)))
    # Kernel uses the tanh form of sigmoid; tolerance covers that tiny delta.
    assert jnp.allclose(out, ref, atol=2e-3, rtol=2e-3), "mismatch vs reference"

    print("KERNEL_OK")
</pallas_src>

<mosaic_0001>
module attributes {stable_mosaic.version = 11 : i64} {
  func.func @decoder_kernel(%arg0: i32, %arg1: memref<8x20xf32, #tpu.memory_space<vmem>>, %arg2: memref<20x128xbf16, #tpu.memory_space<vmem>>, %arg3: memref<1x128xf32, #tpu.memory_space<vmem>>, %arg4: memref<128x256xbf16, #tpu.memory_space<vmem>>, %arg5: memref<1x256xf32, #tpu.memory_space<vmem>>, %arg6: memref<256x784xbf16, #tpu.memory_space<vmem>>, %arg7: memref<1x784xf32, #tpu.memory_space<vmem>>, %arg8: memref<8x784xf32, #tpu.memory_space<vmem>>) attributes {dimension_semantics = [#tpu.dimension_semantics<parallel>], iteration_bounds = array<i64: 1>, scalar_prefetch = 0 : i64, scratch_operands = 0 : i64, tpu.core_type = #tpu.core_type<tc>, window_params = [{transform_indices = @transform_0, window_bounds = array<i64: 8, 20>}, {pipeline_mode = #tpu.pipeline_mode<synchronous>, transform_indices = @transform_1, window_bounds = array<i64: 20, 128>}, {pipeline_mode = #tpu.pipeline_mode<synchronous>, transform_indices = @transform_2, window_bounds = array<i64: 1, 128>}, {pipeline_mode = #tpu.pipeline_mode<synchronous>, transform_indices = @transform_3, window_bounds = array<i64: 128, 256>}, {pipeline_mode = #tpu.pipeline_mode<synchronous>, transform_indices = @transform_4, window_bounds = array<i64: 1, 256>}, {pipeline_mode = #tpu.pipeline_mode<synchronous>, transform_indices = @transform_5, window_bounds = array<i64: 256, 784>}, {pipeline_mode = #tpu.pipeline_mode<synchronous>, transform_indices = @transform_6, window_bounds = array<i64: 1, 784>}, {transform_indices = @transform_7, window_bounds = array<i64: 8, 784>}]} {
    %c0 = arith.constant 0 : index
    %c0_0 = arith.constant 0 : index
    %0 = vector.load %arg1[%c0, %c0_0] : memref<8x20xf32, #tpu.memory_space<vmem>>, vector<8x20xf32>
    %1 = arith.truncf %0 : vector<8x20xf32> to vector<8x20xbf16>
    %c0_1 = arith.constant 0 : index
    %c0_2 = arith.constant 0 : index
    %2 = vector.load %arg2[%c0_1, %c0_2] : memref<20x128xbf16, #tpu.memory_space<vmem>>, vector<20x128xbf16>
    %cst = arith.constant dense<0.000000e+00> : vector<8x128xf32>
    %3 = tpu.matmul %1, %2, %cst {dimension_numbers = #tpu.dot_dimension_numbers<[1], [0], [0], [1], [0, 0, 1, 1], [], []>} : vector<8x20xbf16>, vector<20x128xbf16>, vector<8x128xf32> -> vector<8x128xf32>
    %c0_3 = arith.constant 0 : index
    %c0_4 = arith.constant 0 : index
    %4 = vector.load %arg3[%c0_3, %c0_4] : memref<1x128xf32, #tpu.memory_space<vmem>>, vector<1x128xf32>
    %5 = vector.broadcast %4 : vector<1x128xf32> to vector<8x128xf32>
    %6 = arith.addf %3, %5 : vector<8x128xf32>
    %cst_5 = arith.constant 0.000000e+00 : f32
    %7 = vector.broadcast %cst_5 : f32 to vector<8x128xf32>
    %8 = arith.maximumf %6, %7 : vector<8x128xf32>
    %9 = arith.truncf %8 : vector<8x128xf32> to vector<8x128xbf16>
    %c0_6 = arith.constant 0 : index
    %c0_7 = arith.constant 0 : index
    %10 = vector.load %arg4[%c0_6, %c0_7] : memref<128x256xbf16, #tpu.memory_space<vmem>>, vector<128x256xbf16>
    %cst_8 = arith.constant dense<0.000000e+00> : vector<8x256xf32>
    %11 = tpu.matmul %9, %10, %cst_8 {dimension_numbers = #tpu.dot_dimension_numbers<[1], [0], [0], [1], [0, 0, 1, 1], [], []>} : vector<8x128xbf16>, vector<128x256xbf16>, vector<8x256xf32> -> vector<8x256xf32>
    %c0_9 = arith.constant 0 : index
    %c0_10 = arith.constant 0 : index
    %12 = vector.load %arg5[%c0_9, %c0_10] : memref<1x256xf32, #tpu.memory_space<vmem>>, vector<1x256xf32>
    %13 = vector.broadcast %12 : vector<1x256xf32> to vector<8x256xf32>
    %14 = arith.addf %11, %13 : vector<8x256xf32>
    %cst_11 = arith.constant 0.000000e+00 : f32
    %15 = vector.broadcast %cst_11 : f32 to vector<8x256xf32>
    %16 = arith.maximumf %14, %15 : vector<8x256xf32>
    %17 = arith.truncf %16 : vector<8x256xf32> to vector<8x256xbf16>
    %c0_12 = arith.constant 0 : index
    %c0_13 = arith.constant 0 : index
    %18 = vector.load %arg6[%c0_12, %c0_13] : memref<256x784xbf16, #tpu.memory_space<vmem>>, vector<256x784xbf16>
    %cst_14 = arith.constant dense<0.000000e+00> : vector<8x784xf32>
    %19 = tpu.matmul %17, %18, %cst_14 {dimension_numbers = #tpu.dot_dimension_numbers<[1], [0], [0], [1], [0, 0, 1, 1], [], []>} : vector<8x256xbf16>, vector<256x784xbf16>, vector<8x784xf32> -> vector<8x784xf32>
    %c0_15 = arith.constant 0 : index
    %c0_16 = arith.constant 0 : index
    %20 = vector.load %arg7[%c0_15, %c0_16] : memref<1x784xf32, #tpu.memory_space<vmem>>, vector<1x784xf32>
    %21 = vector.broadcast %20 : vector<1x784xf32> to vector<8x784xf32>
    %22 = arith.addf %19, %21 : vector<8x784xf32>
    %cst_17 = arith.constant 5.000000e-01 : f32
    %23 = vector.broadcast %cst_17 : f32 to vector<8x784xf32>
    %24 = arith.mulf %23, %22 : vector<8x784xf32>
    %25 = math.tanh %24 : vector<8x784xf32>
    %cst_18 = arith.constant 5.000000e-01 : f32
    %26 = vector.broadcast %cst_18 : f32 to vector<8x784xf32>
    %27 = arith.mulf %26, %25 : vector<8x784xf32>
    %cst_19 = arith.constant 5.000000e-01 : f32
    %28 = vector.broadcast %cst_19 : f32 to vector<8x784xf32>
    %29 = arith.addf %27, %28 : vector<8x784xf32>
    %c0_20 = arith.constant 0 : index
    %c0_21 = arith.constant 0 : index
    %30 = vector.load %arg8[%c0_20, %c0_21] : memref<8x784xf32, #tpu.memory_space<vmem>>, vector<8x784xf32>
    tpu.vector_store %arg8[%c0_20, %c0_21], %29 {strides = array<i32>} : memref<8x784xf32, #tpu.memory_space<vmem>>, vector<8x784xf32>,
    return
  }
  func.func @transform_0(%arg0: i32) -> (i32, i32) {
    %c0_i32 = arith.constant 0 : i32
    %c0_i32_0 = arith.constant 0 : i32
    return %arg0, %c0_i32 : i32, i32
  }
  func.func @transform_1(%arg0: i32) -> (i32, i32) {
    %c0_i32 = arith.constant 0 : i32
    %c0_i32_0 = arith.constant 0 : i32
    %c0_i32_1 = arith.constant 0 : i32
    return %c0_i32, %c0_i32_0 : i32, i32
  }
  func.func @transform_2(%arg0: i32) -> (i32, i32) {
    %c0_i32 = arith.constant 0 : i32
    %c0_i32_0 = arith.constant 0 : i32
    %c0_i32_1 = arith.constant 0 : i32
    return %c0_i32, %c0_i32_0 : i32, i32
  }
  func.func @transform_3(%arg0: i32) -> (i32, i32) {
    %c0_i32 = arith.constant 0 : i32
    %c0_i32_0 = arith.constant 0 : i32
    %c0_i32_1 = arith.constant 0 : i32
    return %c0_i32, %c0_i32_0 : i32, i32
  }
  func.func @transform_4(%arg0: i32) -> (i32, i32) {
    %c0_i32 = arith.constant 0 : i32
    %c0_i32_0 = arith.constant 0 : i32
    %c0_i32_1 = arith.constant 0 : i32
    return %c0_i32, %c0_i32_0 : i32, i32
  }
  func.func @transform_5(%arg0: i32) -> (i32, i32) {
    %c0_i32 = arith.constant 0 : i32
    %c0_i32_0 = arith.constant 0 : i32
    %c0_i32_1 = arith.constant 0 : i32
    return %c0_i32, %c0_i32_0 : i32, i32
  }
  func.func @transform_6(%arg0: i32) -> (i32, i32) {
    %c0_i32 = arith.constant 0 : i32
    %c0_i32_0 = arith.constant 0 : i32
    %c0_i32_1 = arith.constant 0 : i32
    return %c0_i32, %c0_i32_0 : i32, i32
  }
  func.func @transform_7(%arg0: i32) -> (i32, i32) {
    %c0_i32 = arith.constant 0 : i32
    %c0_i32_0 = arith.constant 0 : i32
    return %arg0, %c0_i32 : i32, i32
  }
}

</mosaic_0001>

<bundles_post_ra>
// kernel: decoder_forward.1
= control target key start
LH: loop header
LB: loop body
LE: loop exit
PB: predicated region body
PF: predicated region fallthrough
CT: control target
= control target key end

     0   :  { %vm50_vm0 = vcmask 1041408   ;;  %vm46_vm1 = vcmask 162816   ;;  %s2700_s0 = inlined_call_operand.vmem [shape: f32[8,20], index: 0, kind: input, shape index: {}]   ;;  %s2701_s1 = inlined_call_operand.vmem [shape: bf16[20,128], index: 1, kind: input, shape index: {}]   ;;  %s2702_s2 = inlined_call_operand.vmem [shape: f32[1,128], index: 2, kind: input, shape index: {}]   ;;  %s2703_s3 = inlined_call_operand.vmem [shape: bf16[128,256], index: 3, kind: input, shape index: {}]   ;;  %s2704_s4 = inlined_call_operand.vmem [shape: f32[1,256], index: 4, kind: input, shape index: {}]   ;;  %s2705_s5 = inlined_call_operand.vmem [shape: bf16[256,784], index: 5, kind: input, shape index: {}]   ;;  %s2706_s6 = inlined_call_operand.vmem [shape: f32[1,784], index: 6, kind: input, shape index: {}]   ;;  %s2707_s7 = inlined_call_operand.hbm [shape: f32[8,784], index: 7, kind: output, shape index: {}]  }
   0x1   :  { %v32_v0 = vld [vmem:[%s2701_s1 + $0x8] sm:$0x3]  ;;  %v1218_v2 = vld [vmem:[%s2703_s3 + $0x70] sm:$0xf]  ;;  %v1688_v3 = vld [vmem:[%s2703_s3 + $0x74] sm:$0xf0] }
   0x2   :  { %v42_v1 = vunpack.c.l.b16 %v32_v0  ;;  %v1687_v4 = vld [vmem:[%s2703_s3 + $0x74] sm:$0xf]  ;;  %v1219_v5 = vor.u32 %v1688_v3, %v1218_v2  ;;  %v1220_v6 = vld [vmem:[%s2703_s3 + $0x78] sm:$0xf0]  ;;  %v1210_v7 = vld [vmem:[%s2703_s3 + $0x60] sm:$0xf] }
   0x3   :  { %v1686_v8 = vld [vmem:[%s2703_s3 + $0x64] sm:$0xf0]  ;;  %v1223_v10 = vor.u32 %v1687_v4, %v1220_v6  ;;  %v1685_v11 = vld [vmem:[%s2703_s3 + $0x64] sm:$0xf]  ;;  %v1212_v12 = vld [vmem:[%s2703_s3 + $0x68] sm:$0xf0] }
   0x4   :  { %v44_v9 = vpack.c.b16 %v42_v1, %v42_v1  ;;  %171 = vmatpush.bf16.msra.mxu1 %v1219_v5  ;;  %v1211_v13 = vor.u32 %v1686_v8, %v1210_v7  ;;  %v1672_v15 = vld [vmem:[%s2701_s1] sm:$0xff]  ;;  %v1215_v16 = vor.u32 %v1685_v11, %v1212_v12  ;;  %v1202_v17 = vld [vmem:[%s2703_s3 + $0x50] sm:$0xf]  ;;  %v1684_v18 = vld [vmem:[%s2703_s3 + $0x54] sm:$0xf0] }
   0x5   :  { %184 = vmatpush.bf16.msra.mxu2 %v1223_v10  ;;  %v28_v19 = vld [vmem:[%s2700_s0] sm:$0xff]  ;;  %v1683_v20 = vld [vmem:[%s2703_s3 + $0x54] sm:$0xf]  ;;  %v1204_v21 = vld [vmem:[%s2703_s3 + $0x58] sm:$0xf0]  ;;  %v1203_v22 = vor.u32 %v1684_v18, %v1202_v17 }
   0x6   :  { %v52_v14 = vsel %vm50_vm0, %v44_v9, 0  ;;  %v29_v23 = vpack.c.bf16 %v28_v19, %v28_v19  ;;  %v1207_v24 = vor.u32 %v1683_v20, %v1204_v21  ;;  %v1194_v25 = vld [vmem:[%s2703_s3 + $0x40] sm:$0xf]  ;;  %v1682_v26 = vld [vmem:[%s2703_s3 + $0x44] sm:$0xf0] }
   0x7   :  { %60 = vmatpush.bf16.msra.mxu0 %v52_v14  ;;  %v1681_v27 = vld [vmem:[%s2703_s3 + $0x44] sm:$0xf]  ;;  %v1196_v28 = vld [vmem:[%s2703_s3 + $0x48] sm:$0xf0] }
   0x8   :  { %172 = vmatpush.bf16.msra.mxu1 %v1211_v13 }
   0x9   :  { %185 = vmatpush.bf16.msra.mxu2 %v1215_v16 }
   0xb   :  { %61 = vmatpush.bf16.msra.mxu0 %v1672_v15 }
   0xc   :  { %12 = vsyncpa [#allocation3], 0  ;;  %173 = vmatpush.bf16.msra.mxu1 %v1203_v22  ;;  %v1195_v29 = vor.u32 %v1682_v26, %v1194_v25  ;;  %v1199_v30 = vor.u32 %v1681_v27, %v1196_v28  ;;  %v1186_v31 = vld [vmem:[%s2703_s3 + $0x30] sm:$0xf]  ;;  %v1680_v32 = vld [vmem:[%s2703_s3 + $0x34] sm:$0xf0] }
   0xd   :  { %186 = vmatpush.bf16.msra.mxu2 %v1207_v24  ;;  %v1679_v33 = vld [vmem:[%s2703_s3 + $0x34] sm:$0xf]  ;;  %v1188_v34 = vld [vmem:[%s2703_s3 + $0x38] sm:$0xf0]  ;;  %v1187_v35 = vor.u32 %v1680_v32, %v1186_v31  ;;  %v1178_v37 = vld [vmem:[%s2703_s3 + $0x20] sm:$0xf] }
   0xe   :  { %1159 = vmatmul.msk.bf16.vlgmr.msra.gmra.mxu0 %vm46_vm1, %v29_v23  ;;  %v1191_v36 = vor.u32 %v1679_v33, %v1188_v34  ;;  %v1678_v38 = vld [vmem:[%s2703_s3 + $0x24] sm:$0xf0]  ;;  %v1677_v39 = vld [vmem:[%s2703_s3 + $0x24] sm:$0xf]  ;;  %v1180_v40 = vld [vmem:[%s2703_s3 + $0x28] sm:$0xf0] }
   0xf   :  { %v1179_v41 = vor.u32 %v1678_v38, %v1178_v37  ;;  %v1183_v42 = vor.u32 %v1677_v39, %v1180_v40  ;;  %v1170_v43 = vld [vmem:[%s2703_s3 + $0x10] sm:$0xf]  ;;  %v1676_v44 = vld [vmem:[%s2703_s3 + $0x14] sm:$0xf0]  ;;  %v1675_v45 = vld [vmem:[%s2703_s3 + $0x14] sm:$0xf] }
  0x10   :  { %174 = vmatpush.bf16.msra.mxu1 %v1195_v29  ;;  %v1171_v46 = vor.u32 %v1676_v44, %v1170_v43  ;;  %v1172_v47 = vld [vmem:[%s2703_s3 + $0x18] sm:$0xf0]  ;;  %v1162_v49 = vld [vmem:[%s2703_s3] sm:$0xf]  ;;  %v1674_v50 = vld [vmem:[%s2703_s3 + $0x4] sm:$0xf0] }
  0x11   :  { %187 = vmatpush.bf16.msra.mxu2 %v1199_v30  ;;  %v1175_v48 = vor.u32 %v1675_v45, %v1172_v47  ;;  %v1673_v51 = vld [vmem:[%s2703_s3 + $0x4] sm:$0xf]  ;;  %v1163_v52 = vor.u32 %v1674_v50, %v1162_v49  ;;  %v1164_v53 = vld [vmem:[%s2703_s3 + $0x8] sm:$0xf0]  ;;  %v1422_v55 = vld [vmem:[%s2705_s5 + $0x188] sm:$0xf] }
  0x12   :  { %v1167_v54 = vor.u32 %v1673_v51, %v1164_v53  ;;  %v1741_v56 = vld [vmem:[%s2705_s5 + $0x1a0] sm:$0xf0]  ;;  %v1738_v57 = vld [vmem:[%s2705_s5 + $0x18c] sm:$0xf]  ;;  %v1424_v59 = vld [vmem:[%s2705_s5 + $0x1a4] sm:$0xf0] }
  0x13   :  { %v1423_v58 = vor.u32 %v1741_v56, %v1422_v55  ;;  %v1394_v60 = vld [vmem:[%s2705_s5 + $0x150] sm:$0xf]  ;;  %v1734_v61 = vld [vmem:[%s2705_s5 + $0x168] sm:$0xf0]  ;;  %v1427_v62 = vor.u32 %v1738_v57, %v1424_v59  ;;  %v1731_v63 = vld [vmem:[%s2705_s5 + $0x154] sm:$0xf] }
  0x14   :  { %175 = vmatpush.bf16.msra.mxu1 %v1187_v35  ;;  %v1396_v0 = vld [vmem:[%s2705_s5 + $0x16c] sm:$0xf0]  ;;  %v1646_v1 = vld [vmem:[%s2705_s5 + $0x348] sm:$0xf]  ;;  %v1395_v2 = vor.u32 %v1734_v61, %v1394_v60  ;;  %v1797_v3 = vld [vmem:[%s2705_s5 + $0x360] sm:$0xf0] }
  0x15   :  { %188 = vmatpush.bf16.msra.mxu2 %v1191_v36  ;;  %921 = vmatpush.bf16.msra.mxu3 %v1423_v58  ;;  %v1794_v4 = vld [vmem:[%s2705_s5 + $0x34c] sm:$0xf]  ;;  %v1648_v5 = vld [vmem:[%s2705_s5 + $0x364] sm:$0xf0]  ;;  %v1399_v6 = vor.u32 %v1731_v63, %v1396_v0  ;;  %v1647_v7 = vor.u32 %v1797_v3, %v1646_v1  ;;  %v1366_v9 = vld [vmem:[%s2705_s5 + $0x118] sm:$0xf] }
  0x16   :  { %v1651_v8 = vor.u32 %v1794_v4, %v1648_v5  ;;  %v1727_v10 = vld [vmem:[%s2705_s5 + $0x130] sm:$0xf0]  ;;  %v1724_v11 = vld [vmem:[%s2705_s5 + $0x11c] sm:$0xf]  ;;  %v1368_v12 = vld [vmem:[%s2705_s5 + $0x134] sm:$0xf0] }
  0x17   :  { %v1618_v13 = vld [vmem:[%s2705_s5 + $0x310] sm:$0xf]  ;;  %v1790_v14 = vld [vmem:[%s2705_s5 + $0x328] sm:$0xf0]  ;;  %934 = vmatpush.bf16.msrb.mxu0 %v1647_v7  ;;  %v1787_v16 = vld [vmem:[%s2705_s5 + $0x314] sm:$0xf]  ;;  %v1367_v18 = vor.u32 %v1727_v10, %v1366_v9  ;;  %v1371_v22 = vor.u32 %v1724_v11, %v1368_v12 }
  0x18   :  { %176 = vmatpush.bf16.msra.mxu1 %v1179_v41  ;;  %v1619_v15 = vor.u32 %v1790_v14, %v1618_v13  ;;  %v1620_v17 = vld [vmem:[%s2705_s5 + $0x32c] sm:$0xf0]  ;;  %v1338_v20 = vld [vmem:[%s2705_s5 + $0xe0] sm:$0xf]  ;;  %v1720_v21 = vld [vmem:[%s2705_s5 + $0xf8] sm:$0xf0] }
  0x19   :  { %189 = vmatpush.bf16.msra.mxu2 %v1183_v42  ;;  %922 = vmatpush.bf16.msra.mxu3 %v1395_v2  ;;  %v1623_v19 = vor.u32 %v1787_v16, %v1620_v17  ;;  %v1590_v23 = vld [vmem:[%s2705_s5 + $0x2d8] sm:$0xf]  ;;  %v1783_v24 = vld [vmem:[%s2705_s5 + $0x2f0] sm:$0xf0]  ;;  %v1780_v25 = vld [vmem:[%s2705_s5 + $0x2dc] sm:$0xf]  ;;  %v1339_v32 = vor.u32 %v1720_v21, %v1338_v20 }
  0x1a   :  { %v1717_v26 = vld [vmem:[%s2705_s5 + $0xe4] sm:$0xf]  ;;  %v1340_v27 = vld [vmem:[%s2705_s5 + $0xfc] sm:$0xf0]  ;;  %v1592_v28 = vld [vmem:[%s2705_s5 + $0x2f4] sm:$0xf0]  ;;  %v1591_v29 = vor.u32 %v1783_v24, %v1590_v23 }
  0x1b   :  { %935 = vmatpush.bf16.msrb.mxu0 %v1619_v15  ;;  %v1595_v30 = vor.u32 %v1780_v25, %v1592_v28  ;;  %v1562_v31 = vld [vmem:[%s2705_s5 + $0x2a0] sm:$0xf]  ;;  %v1776_v33 = vld [vmem:[%s2705_s5 + $0x2b8] sm:$0xf0]  ;;  %v1773_v34 = vld [vmem:[%s2705_s5 + $0x2a4] sm:$0xf]  ;;  %v1343_v36 = vor.u32 %v1717_v26, %v1340_v27 }
  0x1c   :  { %177 = vmatpush.bf16.msra.mxu1 %v1171_v46  ;;  %v1564_v35 = vld [vmem:[%s2705_s5 + $0x2bc] sm:$0xf0]  ;;  %v1310_v37 = vld [vmem:[%s2705_s5 + $0xa8] sm:$0xf]  ;;  %v1713_v38 = vld [vmem:[%s2705_s5 + $0xc0] sm:$0xf0]  ;;  %v1563_v41 = vor.u32 %v1776_v33, %v1562_v31 }
  0x1d   :  { %190 = vmatpush.bf16.msra.mxu2 %v1175_v48  ;;  %923 = vmatpush.bf16.msra.mxu3 %v1367_v18  ;;  %v1710_v39 = vld [vmem:[%s2705_s5 + $0xac] sm:$0xf]  ;;  %v1312_v40 = vld [vmem:[%s2705_s5 + $0xc4] sm:$0xf0]  ;;  %v1567_v42 = vor.u32 %v1773_v34, %v1564_v35  ;;  %v1311_v44 = vor.u32 %v1713_v38, %v1310_v37  ;;  %v1769_v45 = vld [vmem:[%s2705_s5 + $0x280] sm:$0xf0] }
  0x1e   :  { %v1534_v43 = vld [vmem:[%s2705_s5 + $0x268] sm:$0xf]  ;;  %v1766_v46 = vld [vmem:[%s2705_s5 + $0x26c] sm:$0xf]  ;;  %v1315_v48 = vor.u32 %v1710_v39, %v1312_v40  ;;  %v1282_v49 = vld [vmem:[%s2705_s5 + $0x70] sm:$0xf] }
  0x1f   :  { %936 = vmatpush.bf16.msrb.mxu0 %v1591_v29  ;;  %v1536_v47 = vld [vmem:[%s2705_s5 + $0x284] sm:$0xf0]  ;;  %v1706_v50 = vld [vmem:[%s2705_s5 + $0x88] sm:$0xf0]  ;;  %v1703_v51 = vld [vmem:[%s2705_s5 + $0x74] sm:$0xf]  ;;  %v1535_v53 = vor.u32 %v1769_v45, %v1534_v43 }
  0x20   :  { %178 = vmatpush.bf16.msra.mxu1 %v1163_v52  ;;  %v1284_v52 = vld [vmem:[%s2705_s5 + $0x8c] sm:$0xf0]  ;;  %v1283_v56 = vor.u32 %v1706_v50, %v1282_v49  ;;  %v1762_v57 = vld [vmem:[%s2705_s5 + $0x248] sm:$0xf0]  ;;  %v1759_v58 = vld [vmem:[%s2705_s5 + $0x234] sm:$0xf] }
  0x21   :  { %191 = vmatpush.bf16.msra.mxu2 %v1167_v54  ;;  %924 = vmatpush.bf16.msra.mxu3 %v1339_v32  ;;  %v1539_v54 = vor.u32 %v1766_v46, %v1536_v47  ;;  %v1506_v55 = vld [vmem:[%s2705_s5 + $0x230] sm:$0xf]  ;;  %v1287_v60 = vor.u32 %v1703_v51, %v1284_v52  ;;  %v1254_v61 = vld [vmem:[%s2705_s5 + $0x38] sm:$0xf]  ;;  %v1802_v63 = vld [vmem:[%s2702_s2] ss:$0 sm:$0xff] }
  0x22   :  { %v1508_v59 = vld [vmem:[%s2705_s5 + $0x24c] sm:$0xf0]  ;;  %v1696_v0 = vld [vmem:[%s2705_s5 + $0x3c] sm:$0xf]  ;;  %v1256_v1 = vld [vmem:[%s2705_s5 + $0x54] sm:$0xf0]  ;;  %v1507_v2 = vor.u32 %v1762_v57, %v1506_v55 }
  0x23   :  { %937 = vmatpush.bf16.msrb.mxu0 %v1563_v41  ;;  %v1511_v3 = vor.u32 %v1759_v58, %v1508_v59  ;;  %v1478_v4 = vld [vmem:[%s2705_s5 + $0x1f8] sm:$0xf]  ;;  %v1692_v7 = vld [vmem:[%s2705_s5 + $0x18] sm:$0xf0]  ;;  %v1259_v12 = vor.u32 %v1696_v0, %v1256_v1  ;;  %v1689_v13 = vld [vmem:[%s2705_s5 + $0x4] sm:$0xf] }
  0x24   :  { %947 = vmatpush.bf16.msrb.mxu1 %v1427_v62  ;;  %v1699_v62 = vld [vmem:[%s2705_s5 + $0x50] sm:$0xf0]  ;;  %v1752_v9 = vld [vmem:[%s2705_s5 + $0x1fc] sm:$0xf]  ;;  %v1480_v10 = vld [vmem:[%s2705_s5 + $0x214] sm:$0xf0] }
  0x25   :  { %960 = vmatpush.bf16.msrb.mxu2 %v1651_v8  ;;  %925 = vmatpush.bf16.msra.mxu3 %v1311_v44  ;;  %v1255_v5 = vor.u32 %v1699_v62, %v1254_v61  ;;  %v1755_v8 = vld [vmem:[%s2705_s5 + $0x210] sm:$0xf0]  ;;  %v1228_v14 = vld [vmem:[%s2705_s5 + $0x1c] sm:$0xf0]  ;;  %v1430_v15 = vld [vmem:[%s2705_s5 + $0x190] sm:$0xf]  ;;  %v1483_v21 = vor.u32 %v1752_v9, %v1480_v10 }
  0x26   :  { %v1742_v17 = vld [vmem:[%s2705_s5 + $0x1a8] sm:$0xf0]  ;;  %v1739_v18 = vld [vmem:[%s2705_s5 + $0x194] sm:$0xf]  ;;  %v1479_v20 = vor.u32 %v1755_v8, %v1478_v4  ;;  %v1748_v23 = vld [vmem:[%s2705_s5 + $0x1d8] sm:$0xf0]  ;;  %v1231_v29 = vor.u32 %v1689_v13, %v1228_v14 }
  0x27   :  { %938 = vmatpush.bf16.msrb.mxu0 %v1535_v53  ;;  %v1745_v24 = vld [vmem:[%s2705_s5 + $0x1c4] sm:$0xf]  ;;  %v1452_v26 = vld [vmem:[%s2705_s5 + $0x1dc] sm:$0xf0]  ;;  %v1654_v27 = vld [vmem:[%s2705_s5 + $0x350] sm:$0xf]  ;;  %v1431_v34 = vor.u32 %v1742_v17, %v1430_v15 }
  0x28   :  { %948 = vmatpush.bf16.msrb.mxu1 %v1399_v6  ;;  %v1226_v6 = vld [vmem:[%s2705_s5] sm:$0xf]  ;;  %v1795_v31 = vld [vmem:[%s2705_s5 + $0x354] sm:$0xf]  ;;  %v1656_v32 = vld [vmem:[%s2705_s5 + $0x36c] sm:$0xf0]  ;;  %v1455_v41 = vor.u32 %v1745_v24, %v1452_v26 }
  0x29   :  { %961 = vmatpush.bf16.msrb.mxu2 %v1623_v19  ;;  %926 = vmatpush.bf16.msra.mxu3 %v1283_v56  ;;  %v1432_v19 = vld [vmem:[%s2705_s5 + $0x1ac] sm:$0xf0]  ;;  %v1227_v28 = vor.u32 %v1692_v7, %v1226_v6  ;;  %v1735_v37 = vld [vmem:[%s2705_s5 + $0x170] sm:$0xf0]  ;;  %v1732_v39 = vld [vmem:[%s2705_s5 + $0x15c] sm:$0xf]  ;;  %v1659_v43 = vor.u32 %v1795_v31, %v1656_v32 }
  0x2a   :  { %v1435_v35 = vor.u32 %v1739_v18, %v1432_v19  ;;  %v1404_v40 = vld [vmem:[%s2705_s5 + $0x174] sm:$0xf0]  ;;  %v1791_v46 = vld [vmem:[%s2705_s5 + $0x330] sm:$0xf0]  ;;  %v1788_v47 = vld [vmem:[%s2705_s5 + $0x31c] sm:$0xf] }
  0x2b   :  { %939 = vmatpush.bf16.msrb.mxu0 %v1507_v2  ;;  %v1626_v44 = vld [vmem:[%s2705_s5 + $0x318] sm:$0xf]  ;;  %v1407_v50 = vor.u32 %v1732_v39, %v1404_v40  ;;  %v1374_v51 = vld [vmem:[%s2705_s5 + $0x120] sm:$0xf]  ;;  %v1728_v52 = vld [vmem:[%s2705_s5 + $0x138] sm:$0xf0] }
  0x2c   :  { %949 = vmatpush.bf16.msrb.mxu1 %v1371_v22  ;;  %v1450_v22 = vld [vmem:[%s2705_s5 + $0x1c0] sm:$0xf]  ;;  %v1725_v53 = vld [vmem:[%s2705_s5 + $0x124] sm:$0xf]  ;;  %v1627_v55 = vor.u32 %v1791_v46, %v1626_v44  ;;  %v1784_v58 = vld [vmem:[%s2705_s5 + $0x2f8] sm:$0xf0]  ;;  %v1375_v61 = vor.u32 %v1728_v52, %v1374_v51 }
  0x2d   :  { %962 = vmatpush.bf16.msrb.mxu2 %v1595_v30  ;;  %927 = vmatpush.bf16.msra.mxu3 %v1255_v5  ;;  %v1798_v30 = vld [vmem:[%s2705_s5 + $0x368] sm:$0xf0]  ;;  %v1451_v38 = vor.u32 %v1748_v23, %v1450_v22  ;;  %v1598_v57 = vld [vmem:[%s2705_s5 + $0x2e0] sm:$0xf]  ;;  %v1781_v59 = vld [vmem:[%s2705_s5 + $0x2e4] sm:$0xf] }
  0x2e   :  { %v1721_v0 = vld [vmem:[%s2705_s5 + $0x100] sm:$0xf0]  ;;  %v1718_v1 = vld [vmem:[%s2705_s5 + $0xec] sm:$0xf]  ;;  %v1348_v2 = vld [vmem:[%s2705_s5 + $0x104] sm:$0xf0] }
  0x2f   :  { %940 = vmatpush.bf16.msrb.mxu0 %v1479_v20  ;;  %v1570_v5 = vld [vmem:[%s2705_s5 + $0x2a8] sm:$0xf]  ;;  %v1777_v6 = vld [vmem:[%s2705_s5 + $0x2c0] sm:$0xf0]  ;;  %v1774_v7 = vld [vmem:[%s2705_s5 + $0x2ac] sm:$0xf]  ;;  %v1351_v10 = vor.u32 %v1718_v1, %v1348_v2 }
  0x30   :  { %950 = vmatpush.bf16.msrb.mxu1 %v1343_v36  ;;  %v1402_v36 = vld [vmem:[%s2705_s5 + $0x158] sm:$0xf]  ;;  %v1572_v8 = vld [vmem:[%s2705_s5 + $0x2c4] sm:$0xf0]  ;;  %v1711_v13 = vld [vmem:[%s2705_s5 + $0xb4] sm:$0xf]  ;;  %v1571_v15 = vor.u32 %v1777_v6, %v1570_v5 }
  0x31   :  { %963 = vmatpush.bf16.msrb.mxu2 %v1567_v42  ;;  %v1655_v42 = vor.u32 %v1798_v30, %v1654_v27  ;;  %928 = vmatpush.bf16.msra.mxu3 %v1227_v28  ;;  %v1403_v49 = vor.u32 %v1735_v37, %v1402_v36  ;;  %v1320_v14 = vld [vmem:[%s2705_s5 + $0xcc] sm:$0xf0]  ;;  %v1290_v19 = vld [vmem:[%s2705_s5 + $0x78] sm:$0xf]  ;;  %v1707_v20 = vld [vmem:[%s2705_s5 + $0x90] sm:$0xf0] }
  0x32   :  { %v1323_v18 = vor.u32 %v1711_v13, %v1320_v14  ;;  %v1292_v22 = vld [vmem:[%s2705_s5 + $0x94] sm:$0xf0]  ;;  %v1291_v23 = vor.u32 %v1707_v20, %v1290_v19  ;;  %v1770_v26 = vld [vmem:[%s2705_s5 + $0x288] sm:$0xf0]  ;;  %v1767_v28 = vld [vmem:[%s2705_s5 + $0x274] sm:$0xf] }
  0x33   :  { %941 = vmatpush.bf16.msrb.mxu0 %v1451_v38  ;;  %v1262_v31 = vld [vmem:[%s2705_s5 + $0x40] sm:$0xf]  ;;  %v1700_v32 = vld [vmem:[%s2705_s5 + $0x58] sm:$0xf0]  ;;  %v1514_v37 = vld [vmem:[%s2705_s5 + $0x238] sm:$0xf] }
  0x34   :  { %951 = vmatpush.bf16.msrb.mxu1 %v1315_v48  ;;  %v1628_v48 = vld [vmem:[%s2705_s5 + $0x334] sm:$0xf0]  ;;  %v1763_v38 = vld [vmem:[%s2705_s5 + $0x250] sm:$0xf0]  ;;  %v1760_v40 = vld [vmem:[%s2705_s5 + $0x23c] sm:$0xf] }
  0x35   :  { %964 = vmatpush.bf16.msrb.mxu2 %v1539_v54  ;;  %973 = vmatpush.bf16.msrb.mxu3 %v1431_v34  ;;  %v1376_v54 = vld [vmem:[%s2705_s5 + $0x13c] sm:$0xf0]  ;;  %v1631_v56 = vor.u32 %v1788_v47, %v1628_v48  ;;  %v1697_v34 = vld [vmem:[%s2705_s5 + $0x44] sm:$0xf]  ;;  %v1515_v39 = vor.u32 %v1763_v38, %v1514_v37  ;;  %v1690_v46 = vld [vmem:[%s2705_s5 + $0xc] sm:$0xf] }
  0x36   :  { %v1379_v62 = vor.u32 %v1725_v53, %v1376_v54  ;;  %v1693_v44 = vld [vmem:[%s2705_s5 + $0x20] sm:$0xf0]  ;;  %v1236_v47 = vld [vmem:[%s2705_s5 + $0x24] sm:$0xf0]  ;;  %v1488_v53 = vld [vmem:[%s2705_s5 + $0x21c] sm:$0xf0] }
  0x37   :  { %986 = vmatpush.bf16.msra.mxu0 %v1655_v42  ;;  %v1239_v48 = vor.u32 %v1690_v46, %v1236_v47  ;;  %v1753_v52 = vld [vmem:[%s2705_s5 + $0x204] sm:$0xf]  ;;  %v1743_v2 = vld [vmem:[%s2705_s5 + $0x1b0] sm:$0xf0]  ;;  %v1412_v13 = vld [vmem:[%s2705_s5 + $0x17c] sm:$0xf0] }
  0x38   :  { %952 = vmatpush.bf16.msrb.mxu1 %v1287_v60  ;;  %v1600_v60 = vld [vmem:[%s2705_s5 + $0x2fc] sm:$0xf0]  ;;  %v1491_v54 = vor.u32 %v1753_v52, %v1488_v53  ;;  %v1664_v19 = vld [vmem:[%s2705_s5 + $0x374] sm:$0xf0]  ;;  %v1354_v37 = vld [vmem:[%s2705_s5 + $0xf0] sm:$0xf] }
  0x39   :  { %965 = vmatpush.bf16.msrb.mxu2 %v1511_v3  ;;  %974 = vmatpush.bf16.msrb.mxu3 %v1403_v49  ;;  %v1599_v3 = vor.u32 %v1784_v58, %v1598_v57  ;;  %v1603_v4 = vor.u32 %v1781_v59, %v1600_v60  ;;  %v1486_v49 = vld [vmem:[%s2705_s5 + $0x200] sm:$0xf]  ;;  %v1746_v58 = vld [vmem:[%s2705_s5 + $0x1cc] sm:$0xf]  ;;  %v1460_v59 = vld [vmem:[%s2705_s5 + $0x1e4] sm:$0xf0] }
  0x3a   :  { %v1463_v60 = vor.u32 %v1746_v58, %v1460_v59  ;;  %v1722_v38 = vld [vmem:[%s2705_s5 + $0x108] sm:$0xf0]  ;;  %v1608_v47 = vld [vmem:[%s2705_s5 + $0x304] sm:$0xf0]  ;;  %v1712_v52 = vld [vmem:[%s2705_s5 + $0xbc] sm:$0xf] }
  0x3b   :  { %987 = vmatpush.bf16.msra.mxu0 %v1627_v55  ;;  %v1458_v55 = vld [vmem:[%s2705_s5 + $0x1c8] sm:$0xf]  ;;  %v1782_v46 = vld [vmem:[%s2705_s5 + $0x2ec] sm:$0xf]  ;;  %v1328_v53 = vld [vmem:[%s2705_s5 + $0xd4] sm:$0xf0] }
  0x3c   :  { %953 = vmatpush.bf16.msrb.mxu1 %v1259_v12  ;;  %v1714_v12 = vld [vmem:[%s2705_s5 + $0xc8] sm:$0xf0]  ;;  %v1775_v58 = vld [vmem:[%s2705_s5 + $0x2b4] sm:$0xf]  ;;  %v1580_v59 = vld [vmem:[%s2705_s5 + $0x2cc] sm:$0xf0] }
  0x3d   :  { %966 = vmatpush.bf16.msrb.mxu2 %v1483_v21  ;;  %975 = vmatpush.bf16.msrb.mxu3 %v1375_v61  ;;  %v1704_v21 = vld [vmem:[%s2705_s5 + $0x7c] sm:$0xf]  ;;  %v85_v61 = vld [vmem:[%s2704_s4] sm:$0x3]  ;;  %s1146_s15 = sshll.u32 %s2707_s7, 4  ;;  %vm1137_vm2 = vcmask 130048   ;;  %s1147_s15 = int_to_ptr.hbm [resolvable:$true] %s1146_s15 }
  0x3e   :  { %v1295_v24 = vor.u32 %v1704_v21, %v1292_v22  ;;  %v88_v6 = vperm.slane %v85_v61, 1 }
  0x3f   :  { %988 = vmatpush.bf16.msra.mxu0 %v1599_v3  ;;  %v1740_v3 = vld [vmem:[%s2705_s5 + $0x19c] sm:$0xf] }
  0x40   :  { %954 = vmatpush.bf16.msrb.mxu1 %v1231_v29  ;;  %v1544_v29 = vld [vmem:[%s2705_s5 + $0x28c] sm:$0xf0] }
  0x41   :  { %967 = vmatpush.bf16.msrb.mxu2 %v1455_v41  ;;  %v1547_v30 = vor.u32 %v1767_v28, %v1544_v29  ;;  %v1516_v41 = vld [vmem:[%s2705_s5 + $0x254] sm:$0xf0] }
  0x42   :  { %v1519_v42 = vor.u32 %v1760_v40, %v1516_v41  ;;  %v1356_v40 = vld [vmem:[%s2705_s5 + $0x10c] sm:$0xf0] }
  0x43   :  { %989 = vmatpush.bf16.msra.mxu0 %v1571_v15  ;;  %v1662_v15 = vld [vmem:[%s2705_s5 + $0x358] sm:$0xf] }
  0x8b   :  { %v63_v11 = vpop.f32.mrf.mxu0 }
  0x8c   :  { %v64_v16 = vadd.f32 %v1802_v63, %v63_v11  ;;  %v1346_v63 = vld [vmem:[%s2705_s5 + $0xe8] sm:$0xf]  ;;  %v1318_v11 = vld [vmem:[%s2705_s5 + $0xb0] sm:$0xf] }
  0x8d   :  { %v1347_v9 = vor.u32 %v1721_v0, %v1346_v63  ;;  %v1319_v17 = vor.u32 %v1714_v12, %v1318_v11  ;;  %v1438_v0 = vld [vmem:[%s2705_s5 + $0x198] sm:$0xf]  ;;  %v1736_v11 = vld [vmem:[%s2705_s5 + $0x178] sm:$0xf0]  ;;  %v1733_v12 = vld [vmem:[%s2705_s5 + $0x164] sm:$0xf] }
  0x8e   :  { %v67_v25 = vmax.f32 %v64_v16, 0.0  ;;  %v1575_v16 = vor.u32 %v1774_v7, %v1572_v8  ;;  %v1439_v7 = vor.u32 %v1743_v2, %v1438_v0  ;;  %v1415_v22 = vor.u32 %v1733_v12, %v1412_v13  ;;  %v1705_v0 = vld [vmem:[%s2705_s5 + $0x84] sm:$0xf]  ;;  %v1698_v13 = vld [vmem:[%s2705_s5 + $0x4c] sm:$0xf] }
  0x8f   :  { %976 = vmatpush.bf16.msrb.mxu3 %v1347_v9  ;;  %v1410_v9 = vld [vmem:[%s2705_s5 + $0x160] sm:$0xf]  ;;  %v1701_v12 = vld [vmem:[%s2705_s5 + $0x60] sm:$0xf0] }
  0x90   :  { %v68_v33 = vpack.c.bf16 %v67_v25, %v67_v25  ;;  %v1542_v25 = vld [vmem:[%s2705_s5 + $0x270] sm:$0xf]  ;;  %v1411_v21 = vor.u32 %v1736_v11, %v1410_v9  ;;  %v1270_v11 = vld [vmem:[%s2705_s5 + $0x48] sm:$0xf] }
  0x91   :  { %v1543_v27 = vor.u32 %v1770_v26, %v1542_v25  ;;  %v1726_v26 = vld [vmem:[%s2705_s5 + $0x12c] sm:$0xf] }
  0x92   :  { %179 = vmatmul.bf16.vlgmr.msra.gmra.mxu1 %v68_v33  ;;  %192 = vmatmul.bf16.vlgmr.msra.gmra.mxu2 %v68_v33  ;;  %v1263_v33 = vor.u32 %v1700_v32, %v1262_v31  ;;  %v1792_v32 = vld [vmem:[%s2705_s5 + $0x338] sm:$0xf0] }
  0x93   :  { %v65_v45 = vpop.f32.mrf.mxu0  ;;  %999 = vmatpush.bf16.msra.mxu1 %v1435_v35  ;;  %1012 = vmatpush.bf16.msra.mxu2 %v1659_v43  ;;  %v1264_v35 = vld [vmem:[%s2705_s5 + $0x5c] sm:$0xf0]  ;;  %v1234_v43 = vld [vmem:[%s2705_s5 + $0x8] sm:$0xf] }
  0x94   :  { %977 = vmatpush.bf16.msrb.mxu3 %v1319_v17  ;;  %990 = vmatpush.bf16.msra.mxu0 %v1543_v27  ;;  %v1267_v36 = vor.u32 %v1697_v34, %v1264_v35  ;;  %v1235_v45 = vor.u32 %v1693_v44, %v1234_v43  ;;  %v1799_v17 = vld [vmem:[%s2705_s5 + $0x370] sm:$0xf0]  ;;  %v1384_v27 = vld [vmem:[%s2705_s5 + $0x144] sm:$0xf0]  ;;  %v1636_v34 = vld [vmem:[%s2705_s5 + $0x33c] sm:$0xf0] }
  0x95   :  { %v1663_v28 = vor.u32 %v1799_v17, %v1662_v15  ;;  %v1606_v44 = vld [vmem:[%s2705_s5 + $0x2e8] sm:$0xf]  ;;  %v1522_v17 = vld [vmem:[%s2705_s5 + $0x240] sm:$0xf] }
  0x97   :  { %1000 = vmatpush.bf16.msra.mxu1 %v1407_v50  ;;  %1013 = vmatpush.bf16.msra.mxu2 %v1631_v56  ;;  %v1756_v50 = vld [vmem:[%s2705_s5 + $0x218] sm:$0xf0]  ;;  %v1749_v56 = vld [vmem:[%s2705_s5 + $0x1e0] sm:$0xf0] }
  0x98   :  { %978 = vmatpush.bf16.msrb.mxu3 %v1291_v23  ;;  %991 = vmatpush.bf16.msra.mxu0 %v1515_v39  ;;  %v1487_v51 = vor.u32 %v1756_v50, %v1486_v49  ;;  %v1459_v57 = vor.u32 %v1749_v56, %v1458_v55  ;;  %v1382_v23 = vld [vmem:[%s2705_s5 + $0x128] sm:$0xf]  ;;  %v1719_v39 = vld [vmem:[%s2705_s5 + $0xf4] sm:$0xf]  ;;  %v1326_v50 = vld [vmem:[%s2705_s5 + $0xb8] sm:$0xf]  ;;  %v1611_v55 = vor.u32 %v1782_v46, %v1608_v47 }
  0x99   :  { %v1359_v49 = vor.u32 %v1719_v39, %v1356_v40  ;;  %v1578_v56 = vld [vmem:[%s2705_s5 + $0x2b0] sm:$0xf]  ;;  %v1670_v47 = vld [vmem:[%s2705_s5 + $0x360] sm:$0xf] }
  0x9a   :  { %v1468_v46 = vld [vmem:[%s2705_s5 + $0x1ec] sm:$0xf0] }
  0x9b   :  { %1001 = vmatpush.bf16.msra.mxu1 %v1379_v62  ;;  %1014 = vmatpush.bf16.msra.mxu2 %v1603_v4  ;;  %v87_v62 = vperm.slane %v85_v61, 0  ;;  %v1440_v4 = vld [vmem:[%s2705_s5 + $0x1b4] sm:$0xf0]  ;;  %v1331_v61 = vor.u32 %v1712_v52, %v1328_v53  ;;  %v1390_v52 = vld [vmem:[%s2705_s5 + $0x130] sm:$0xf] }
  0x9c   :  { %979 = vmatpush.bf16.msrb.mxu3 %v1263_v33  ;;  %992 = vmatpush.bf16.msra.mxu0 %v1487_v51  ;;  %v1443_v8 = vor.u32 %v1740_v3, %v1440_v4  ;;  %v1789_v33 = vld [vmem:[%s2705_s5 + $0x324] sm:$0xf]  ;;  %v1715_v51 = vld [vmem:[%s2705_s5 + $0xd0] sm:$0xf0]  ;;  %v1583_v3 = vor.u32 %v1775_v58, %v1580_v59  ;;  %v1550_v4 = vld [vmem:[%s2705_s5 + $0x278] sm:$0xf] }
  0x9d   :  { %v1639_v43 = vor.u32 %v1789_v33, %v1636_v34  ;;  %v1757_v33 = vld [vmem:[%s2705_s5 + $0x220] sm:$0xf0]  ;;  %v1754_v34 = vld [vmem:[%s2705_s5 + $0x20c] sm:$0xf]  ;;  %v1362_v58 = vld [vmem:[%s2705_s5 + $0xf8] sm:$0xf] }
  0x9e   :  { %v1730_v53 = vld [vmem:[%s2705_s5 + $0x148] sm:$0xf0]  ;;  %v1723_v59 = vld [vmem:[%s2705_s5 + $0x110] sm:$0xf0] }
  0x9f   :  { %1002 = vmatpush.bf16.msra.mxu1 %v1351_v10  ;;  %1015 = vmatpush.bf16.msra.mxu2 %v1575_v16 }
  0xa0   :  { %980 = vmatpush.bf16.msrb.mxu3 %v1235_v45  ;;  %993 = vmatpush.bf16.msra.mxu0 %v1459_v57  ;;  %v1785_v45 = vld [vmem:[%s2705_s5 + $0x300] sm:$0xf0]  ;;  %v1778_v57 = vld [vmem:[%s2705_s5 + $0x2c8] sm:$0xf0] }
  0xa1   :  { %v1579_v2 = vor.u32 %v1778_v57, %v1578_v56  ;;  %v1793_v56 = vld [vmem:[%s2705_s5 + $0x340] sm:$0xf0]  ;;  %v1391_v57 = vor.u32 %v1730_v53, %v1390_v52 }
  0xa3   :  { %1003 = vmatpush.bf16.msra.mxu1 %v1323_v18  ;;  %1016 = vmatpush.bf16.msra.mxu2 %v1547_v30  ;;  %v1796_v18 = vld [vmem:[%s2705_s5 + $0x35c] sm:$0xf]  ;;  %v1634_v30 = vld [vmem:[%s2705_s5 + $0x320] sm:$0xf] }
  0xa4   :  { %v1667_v29 = vor.u32 %v1796_v18, %v1664_v19  ;;  %v1764_v18 = vld [vmem:[%s2705_s5 + $0x258] sm:$0xf0]  ;;  %v1761_v19 = vld [vmem:[%s2705_s5 + $0x244] sm:$0xf] }
  0xa7   :  { %1004 = vmatpush.bf16.msra.mxu1 %v1295_v24  ;;  %1017 = vmatpush.bf16.msra.mxu2 %v1519_v42  ;;  %v1729_v24 = vld [vmem:[%s2705_s5 + $0x140] sm:$0xf0]  ;;  %v1635_v42 = vor.u32 %v1792_v32, %v1634_v30  ;;  %v1744_v30 = vld [vmem:[%s2705_s5 + $0x1b8] sm:$0xf0]  ;;  %v1494_v32 = vld [vmem:[%s2705_s5 + $0x208] sm:$0xf] }
  0xa8   :  { %v1383_v35 = vor.u32 %v1729_v24, %v1382_v23  ;;  %v1242_v23 = vld [vmem:[%s2705_s5 + $0x10] sm:$0xf]  ;;  %v1694_v24 = vld [vmem:[%s2705_s5 + $0x28] sm:$0xf0]  ;;  %v1495_v39 = vor.u32 %v1757_v33, %v1494_v32 }
  0xab   :  { %1005 = vmatpush.bf16.msra.mxu1 %v1267_v36  ;;  %1018 = vmatpush.bf16.msra.mxu2 %v1491_v54  ;;  %v1387_v36 = vor.u32 %v1726_v26, %v1384_v27  ;;  %v1607_v54 = vor.u32 %v1785_v45, %v1606_v44  ;;  %v1244_v26 = vld [vmem:[%s2705_s5 + $0x2c] sm:$0xf0]  ;;  %v1523_v27 = vor.u32 %v1764_v18, %v1522_v17  ;;  %v1750_v44 = vld [vmem:[%s2705_s5 + $0x1e8] sm:$0xf0]  ;;  %v1747_v45 = vld [vmem:[%s2705_s5 + $0x1d4] sm:$0xf] }
  0xac   :  { %v1765_v17 = vld [vmem:[%s2705_s5 + $0x260] sm:$0xf0] }
  0xaf   :  { %1006 = vmatpush.bf16.msra.mxu1 %v1239_v48  ;;  %1019 = vmatpush.bf16.msra.mxu2 %v1463_v60  ;;  %v1355_v48 = vor.u32 %v1722_v38, %v1354_v37  ;;  %v1327_v60 = vor.u32 %v1715_v51, %v1326_v50  ;;  %v1471_v51 = vor.u32 %v1747_v45, %v1468_v46 }
 0x10f   :  { %v180_v63 = vpop.f32.mrf.mxu1 }
 0x110   :  { %v181_v1 = vadd.f32 %v180_v63, %v87_v62  ;;  %v1298_v62 = vld [vmem:[%s2705_s5 + $0x80] sm:$0xf]  ;;  %v1708_v63 = vld [vmem:[%s2705_s5 + $0x98] sm:$0xf0] }
 0x112   :  { %v197_v5 = vmax.f32 %v181_v1, 0.0  ;;  %v1300_v1 = vld [vmem:[%s2705_s5 + $0x9c] sm:$0xf0] }
 0x113   :  { %v1303_v9 = vor.u32 %v1705_v0, %v1300_v1  ;;  %v1334_v0 = vld [vmem:[%s2705_s5 + $0xc0] sm:$0xf]  ;;  %v1716_v1 = vld [vmem:[%s2705_s5 + $0xd8] sm:$0xf0] }
 0x114   :  { %v2394_v10 = vpack.c.bf16 %v197_v5, %v197_v5  ;;  %v1771_v5 = vld [vmem:[%s2705_s5 + $0x290] sm:$0xf0] }
 0x115   :  { %v193_v14 = vpop.f32.mrf.mxu2  ;;  %v1551_v15 = vor.u32 %v1771_v5, %v1550_v4  ;;  %v1779_v4 = vld [vmem:[%s2705_s5 + $0x2d0] sm:$0xf0]  ;;  %v1335_v5 = vor.u32 %v1716_v1, %v1334_v0 }
 0x116   :  { %v194_v16 = vadd.f32 %v193_v14, %v88_v6  ;;  %929 = vmatmul.bf16.vlgmr.msra.gmra.mxu3 %v2394_v10  ;;  %955 = vmatmul.bf16.vlgmr.msrb.gmra.mxu1 %v2394_v10  ;;  %v1768_v6 = vld [vmem:[%s2705_s5 + $0x27c] sm:$0xf]  ;;  %v1272_v14 = vld [vmem:[%s2705_s5 + $0x64] sm:$0xf0] }
 0x117   :  { %1025 = vmatpush.bf16.msra.mxu3 %v1439_v7  ;;  %v182_v20 = vpop.f32.mrf.mxu1  ;;  %1051 = vmatpush.bf16.msrb.mxu1 %v1443_v8  ;;  %v1552_v7 = vld [vmem:[%s2705_s5 + $0x294] sm:$0xf0]  ;;  %v1299_v8 = vor.u32 %v1708_v63, %v1298_v62  ;;  %v1786_v62 = vld [vmem:[%s2705_s5 + $0x308] sm:$0xf0]  ;;  %v1363_v63 = vor.u32 %v1723_v59, %v1362_v58 }
 0x118   :  { %v198_v25 = vmax.f32 %v194_v16, 0.0  ;;  %v1555_v16 = vor.u32 %v1768_v6, %v1552_v7  ;;  %v1524_v20 = vld [vmem:[%s2705_s5 + $0x25c] sm:$0xf0]  ;;  %v1306_v6 = vld [vmem:[%s2705_s5 + $0x88] sm:$0xf] }
 0x119   :  { %v1709_v7 = vld [vmem:[%s2705_s5 + $0xa0] sm:$0xf0] }
 0x11a   :  { %v2434_v31 = vpack.c.bf16 %v198_v25, %v198_v25  ;;  %v1691_v25 = vld [vmem:[%s2705_s5 + $0x14] sm:$0xf] }
 0x11b   :  { %1026 = vmatpush.bf16.msra.mxu3 %v1411_v21  ;;  %1052 = vmatpush.bf16.msrb.mxu1 %v1415_v22  ;;  %v1271_v21 = vor.u32 %v1701_v12, %v1270_v11  ;;  %v1275_v22 = vor.u32 %v1698_v13, %v1272_v14  ;;  %v1247_v37 = vor.u32 %v1691_v25, %v1244_v26  ;;  %v1772_v11 = vld [vmem:[%s2705_s5 + $0x298] sm:$0xf0]  ;;  %v1278_v13 = vld [vmem:[%s2705_s5 + $0x50] sm:$0xf]  ;;  %v1702_v14 = vld [vmem:[%s2705_s5 + $0x68] sm:$0xf0] }
 0x11c   :  { %942 = vmatmul.bf16.vlgmr.msrb.gmra.mxu0 %v2434_v31  ;;  %968 = vmatmul.bf16.vlgmr.msrb.gmra.mxu2 %v2434_v31  ;;  %v1307_v12 = vor.u32 %v1709_v7, %v1306_v6  ;;  %v1279_v18 = vor.u32 %v1702_v14, %v1278_v13  ;;  %v1474_v26 = vld [vmem:[%s2705_s5 + $0x1d8] sm:$0xf] }
 0x11d   :  { %1038 = vmatpush.bf16.msrb.mxu0 %v1663_v28  ;;  %v195_v41 = vpop.f32.mrf.mxu2  ;;  %1064 = vmatpush.bf16.msrb.mxu2 %v1667_v29  ;;  %v1527_v28 = vor.u32 %v1761_v19, %v1524_v20  ;;  %v1446_v29 = vld [vmem:[%s2705_s5 + $0x1a0] sm:$0xf]  ;;  %v1250_v19 = vld [vmem:[%s2705_s5 + $0x18] sm:$0xf]  ;;  %v1695_v20 = vld [vmem:[%s2705_s5 + $0x30] sm:$0xf0] }
 0x11e   :  { %v1447_v38 = vor.u32 %v1744_v30, %v1446_v29  ;;  %v1418_v41 = vld [vmem:[%s2705_s5 + $0x168] sm:$0xf]  ;;  %v2688_v30 = vld [vmem:[%s2706_s6] sm:$0x7f] }
 0x11f   :  { %1027 = vmatpush.bf16.msra.mxu3 %v1383_v35  ;;  %1053 = vmatpush.bf16.msrb.mxu1 %v1387_v36  ;;  %v1496_v35 = vld [vmem:[%s2705_s5 + $0x224] sm:$0xf0]  ;;  %v1243_v36 = vor.u32 %v1694_v24, %v1242_v23  ;;  %v1758_v23 = vld [vmem:[%s2705_s5 + $0x228] sm:$0xf0]  ;;  %v1251_v24 = vor.u32 %v1695_v20, %v1250_v19  ;;  %v331_v32 = vperm.slane %v2688_v30, 0  ;;  %v333_v46 = vperm.slane %v2688_v30, 2 }
 0x120   :  { %v1499_v40 = vor.u32 %v1754_v34, %v1496_v35  ;;  %v332_v35 = vperm.slane %v2688_v30, 1  ;;  %v334_v53 = vperm.slane %v2688_v30, 3  ;;  %v336_v14 = vperm.slane %v2688_v30, 5 }
 0x121   :  { %1039 = vmatpush.bf16.msrb.mxu0 %v1635_v42  ;;  %1065 = vmatpush.bf16.msrb.mxu2 %v1639_v43  ;;  %v1737_v42 = vld [vmem:[%s2705_s5 + $0x180] sm:$0xf0]  ;;  %v1466_v43 = vld [vmem:[%s2705_s5 + $0x1d0] sm:$0xf] }
 0x122   :  { %v1467_v50 = vor.u32 %v1750_v44, %v1466_v43 }
 0x123   :  { %1028 = vmatpush.bf16.msra.mxu3 %v1355_v48  ;;  %1054 = vmatpush.bf16.msrb.mxu1 %v1359_v49  ;;  %v1800_v48 = vld [vmem:[%s2705_s5 + $0x378] sm:$0xf0]  ;;  %v1419_v49 = vor.u32 %v1737_v42, %v1418_v41 }
 0x125   :  { %1040 = vmatpush.bf16.msrb.mxu0 %v1607_v54  ;;  %1066 = vmatpush.bf16.msrb.mxu2 %v1611_v55  ;;  %v1671_v54 = vor.u32 %v1800_v48, %v1670_v47  ;;  %v1642_v55 = vld [vmem:[%s2705_s5 + $0x328] sm:$0xf] }
 0x126   :  { %981 = vmatmul.bf16.vlgmr.msrb.gmra.mxu3 %v2394_v10  ;;  %1007 = vmatmul.bf16.vlgmr.msra.gmra.mxu1 %v2394_v10 }
 0x127   :  { %1029 = vmatpush.bf16.msra.mxu3 %v1327_v60  ;;  %1055 = vmatpush.bf16.msrb.mxu1 %v1331_v61  ;;  %v1643_v60 = vor.u32 %v1793_v56, %v1642_v55  ;;  %v1614_v61 = vld [vmem:[%s2705_s5 + $0x2f0] sm:$0xf] }
 0x129   :  { %1041 = vmatpush.bf16.msrb.mxu0 %v1579_v2  ;;  %1067 = vmatpush.bf16.msrb.mxu2 %v1583_v3  ;;  %v1615_v2 = vor.u32 %v1786_v62, %v1614_v61  ;;  %v1586_v3 = vld [vmem:[%s2705_s5 + $0x2b8] sm:$0xf] }
 0x12b   :  { %1030 = vmatpush.bf16.msra.mxu3 %v1299_v8  ;;  %1056 = vmatpush.bf16.msrb.mxu1 %v1303_v9  ;;  %v1587_v8 = vor.u32 %v1779_v4, %v1586_v3  ;;  %v1558_v9 = vld [vmem:[%s2705_s5 + $0x280] sm:$0xf]  ;;  %v335_v4 = vperm.slane %v2688_v30, 4 }
 0x12c   :  { %994 = vmatmul.bf16.vlgmr.msra.gmra.mxu0 %v2434_v31  ;;  %1020 = vmatmul.bf16.vlgmr.msra.gmra.mxu2 %v2434_v31 }
 0x12d   :  { %1042 = vmatpush.bf16.msrb.mxu0 %v1551_v15  ;;  %1068 = vmatpush.bf16.msrb.mxu2 %v1555_v16  ;;  %v1559_v15 = vor.u32 %v1772_v11, %v1558_v9  ;;  %v1530_v16 = vld [vmem:[%s2705_s5 + $0x248] sm:$0xf] }
 0x12f   :  { %1031 = vmatpush.bf16.msra.mxu3 %v1271_v21  ;;  %1057 = vmatpush.bf16.msrb.mxu1 %v1275_v22  ;;  %v1531_v21 = vor.u32 %v1765_v17, %v1530_v16  ;;  %v1502_v22 = vld [vmem:[%s2705_s5 + $0x210] sm:$0xf] }
 0x130   :  { %v1503_v25 = vor.u32 %v1758_v23, %v1502_v22 }
 0x131   :  { %1043 = vmatpush.bf16.msrb.mxu0 %v1523_v27  ;;  %1069 = vmatpush.bf16.msrb.mxu2 %v1527_v28  ;;  %v1751_v27 = vld [vmem:[%s2705_s5 + $0x1f0] sm:$0xf0]  ;;  %s1843_s5 = smov [#allocation2]  }
 0x132   :  { %v1475_v28 = vor.u32 %v1751_v27, %v1474_v26  ;;  %s1144_s6 = sshll.u32 %s1843_s5, 4  ;;  %s1145_s6 = int_to_ptr.vmem [resolvable:$true] %s1144_s6 }
 0x133   :  { %1032 = vmatpush.bf16.msra.mxu3 %v1243_v36  ;;  %1058 = vmatpush.bf16.msrb.mxu1 %v1247_v37 }
 0x135   :  { %1044 = vmatpush.bf16.msrb.mxu0 %v1495_v39  ;;  %1070 = vmatpush.bf16.msrb.mxu2 %v1499_v40 }
 0x136   :  { %1033 = vmatmul.bf16.vlgmr.msra.gmra.mxu3 %v2394_v10  ;;  %1059 = vmatmul.bf16.vlgmr.msrb.gmra.mxu1 %v2394_v10 }
 0x137   :  { %1077 = vmatpush.bf16.msrb.mxu3 %v1447_v38 }
 0x139   :  { %1045 = vmatpush.bf16.msrb.mxu0 %v1467_v50  ;;  %1071 = vmatpush.bf16.msrb.mxu2 %v1471_v51 }
 0x13b   :  { %1078 = vmatpush.bf16.msrb.mxu3 %v1419_v49 }
 0x13c   :  { %1046 = vmatmul.bf16.vlgmr.msrb.gmra.mxu0 %v2434_v31  ;;  %1072 = vmatmul.bf16.vlgmr.msrb.gmra.mxu2 %v2434_v31 }
 0x13d   :  { %1090 = vmatpush.bf16.msra.mxu0 %v1671_v54 }
 0x13f   :  { %1079 = vmatpush.bf16.msrb.mxu3 %v1391_v57 }
 0x141   :  { %1091 = vmatpush.bf16.msra.mxu0 %v1643_v60 }
 0x143   :  { %1080 = vmatpush.bf16.msrb.mxu3 %v1363_v63 }
 0x145   :  { %1092 = vmatpush.bf16.msra.mxu0 %v1615_v2 }
 0x147   :  { %1081 = vmatpush.bf16.msrb.mxu3 %v1335_v5 }
 0x149   :  { %1093 = vmatpush.bf16.msra.mxu0 %v1587_v8 }
 0x14b   :  { %1082 = vmatpush.bf16.msrb.mxu3 %v1307_v12 }
 0x14d   :  { %1094 = vmatpush.bf16.msra.mxu0 %v1559_v15 }
 0x14f   :  { %1083 = vmatpush.bf16.msrb.mxu3 %v1279_v18 }
 0x151   :  { %1095 = vmatpush.bf16.msra.mxu0 %v1531_v21 }
 0x153   :  { %1084 = vmatpush.bf16.msrb.mxu3 %v1251_v24 }
 0x155   :  { %1096 = vmatpush.bf16.msra.mxu0 %v1503_v25 }
 0x156   :  { %1085 = vmatmul.bf16.vlgmr.msrb.gmra.mxu3 %v2394_v10 }
 0x159   :  { %1097 = vmatpush.bf16.msra.mxu0 %v1475_v28 }
 0x15c   :  { %1098 = vmatmul.bf16.vlgmr.msra.gmra.mxu0 %v2434_v31 }
 0x193   :  { %v956_v29 = vpop.f32.mrf.mxu1 }
 0x194   :  { %v957_v39 = vadd.f32 %v956_v29, %v332_v35 }
 0x199   :  { %v930_v33 = vpop.f32.mrf.mxu3  ;;  %v943_v34 = vpop.f32.mrf.mxu0 }
 0x19a   :  { %v931_v36 = vadd.f32 %v930_v33, %v331_v32 }
 0x19b   :  { %v958_v37 = vpop.f32.mrf.mxu1 }
 0x19c   :  { %v944_v38 = vadd.f32 %v943_v34, %v931_v36  ;;  %v337_v34 = vperm.slane %v2688_v30, 6 }
 0x19e   :  { %v1103_v10 = vmul.f32 0.5, %v944_v38 }
 0x19f   :  { %v969_v40 = vpop.f32.mrf.mxu2 }
 0x1a0   :  { %1803 = vtanh.f32 %v1103_v10  ;;  %v970_v31 = vadd.f32 %v969_v40, %v957_v39 }
 0x1a1   :  { %v932_v41 = vpop.f32.mrf.mxu3  ;;  %v945_v42 = vpop.f32.mrf.mxu0 }
 0x1a2   :  { %v1104_v43 = vmul.f32 0.5, %v970_v31 }
 0x1a3   :  { %v1008_v44 = vpop.f32.mrf.mxu1 }
 0x1a4   :  { %1805 = vtanh.f32 %v1104_v43  ;;  %v1009_v59 = vadd.f32 %v1008_v44, %v334_v53 }
 0x1a6   :  { %v1804_v45 = vpop.eup %1803 }
 0x1a7   :  { %v1117_v47 = vmul.f32 0.5, %v1804_v45  ;;  %v971_v48 = vpop.f32.mrf.mxu2 }
 0x1a9   :  { %v1124_v49 = vadd.f32 0.5, %v1117_v47  ;;  %v982_v50 = vpop.f32.mrf.mxu3  ;;  %v995_v51 = vpop.f32.mrf.mxu0 }
 0x1aa   :  { %v1806_v52 = vpop.eup %1805  ;;  %v983_v54 = vadd.f32 %v982_v50, %v333_v46 }
 0x1ab   :  { %1131 = vst [vmem:[#allocation2] sm:$0xff] %v1124_v49  ;;  %v1118_v55 = vmul.f32 0.5, %v1806_v52  ;;  %v1010_v56 = vpop.f32.mrf.mxu1 }
 0x1ac   :  { %v996_v57 = vadd.f32 %v995_v51, %v983_v54 }
 0x1ad   :  { %v1125_v58 = vadd.f32 0.5, %v1118_v55 }
 0x1ae   :  { %v1105_v60 = vmul.f32 0.5, %v996_v57 }
 0x1af   :  { %1132 = vst [vmem:[#allocation2 + $0x8] sm:$0xff] %v1125_v58  ;;  %v1021_v61 = vpop.f32.mrf.mxu2 }
 0x1b0   :  { %1807 = vtanh.f32 %v1105_v60  ;;  %v1022_v62 = vadd.f32 %v1021_v61, %v1009_v59 }
 0x1b1   :  { %v984_v63 = vpop.f32.mrf.mxu3  ;;  %v997_v0 = vpop.f32.mrf.mxu0 }
 0x1b2   :  { %v1106_v1 = vmul.f32 0.5, %v1022_v62 }
 0x1b3   :  { %v1060_v2 = vpop.f32.mrf.mxu1 }
 0x1b4   :  { %1809 = vtanh.f32 %v1106_v1  ;;  %v1061_v19 = vadd.f32 %v1060_v2, %v336_v14 }
 0x1b6   :  { %v1808_v3 = vpop.eup %1807 }
 0x1b7   :  { %v1119_v5 = vmul.f32 0.5, %v1808_v3  ;;  %v1023_v6 = vpop.f32.mrf.mxu2 }
 0x1b9   :  { %v1126_v7 = vadd.f32 0.5, %v1119_v5  ;;  %v1034_v8 = vpop.f32.mrf.mxu3  ;;  %v1047_v9 = vpop.f32.mrf.mxu0 }
 0x1ba   :  { %v1810_v11 = vpop.eup %1809  ;;  %v1035_v12 = vadd.f32 %v1034_v8, %v335_v4 }
 0x1bb   :  { %1133 = vst [vmem:[#allocation2 + $0x10] sm:$0xff] %v1126_v7  ;;  %v1120_v13 = vmul.f32 0.5, %v1810_v11  ;;  %v1062_v15 = vpop.f32.mrf.mxu1 }
 0x1bc   :  { %v1048_v16 = vadd.f32 %v1047_v9, %v1035_v12 }
 0x1bd   :  { %v1127_v17 = vadd.f32 0.5, %v1120_v13 }
 0x1be   :  { %v1107_v18 = vmul.f32 0.5, %v1048_v16 }
 0x1bf   :  { %1134 = vst [vmem:[#allocation2 + $0x18] sm:$0xff] %v1127_v17  ;;  %v1073_v20 = vpop.f32.mrf.mxu2 }
 0x1c0   :  { %1811 = vtanh.f32 %v1107_v18  ;;  %v1074_v21 = vadd.f32 %v1073_v20, %v1061_v19 }
 0x1c1   :  { %v1036_v22 = vpop.f32.mrf.mxu3  ;;  %v1049_v23 = vpop.f32.mrf.mxu0 }
 0x1c2   :  { %v1108_v24 = vmul.f32 0.5, %v1074_v21 }
 0x1c4   :  { %1813 = vtanh.f32 %v1108_v24 }
 0x1c6   :  { %v1812_v25 = vpop.eup %1811 }
 0x1c7   :  { %v1121_v26 = vmul.f32 0.5, %v1812_v25  ;;  %v1075_v27 = vpop.f32.mrf.mxu2 }
 0x1c9   :  { %v1128_v28 = vadd.f32 0.5, %v1121_v26 }
 0x1ca   :  { %v1814_v29 = vpop.eup %1813 }
 0x1cb   :  { %1135 = vst [vmem:[#allocation2 + $0x20] sm:$0xff] %v1128_v28  ;;  %v1122_v32 = vmul.f32 0.5, %v1814_v29 }
 0x1cd   :  { %v1129_v33 = vadd.f32 0.5, %v1122_v32 }
 0x1cf   :  { %1136 = vst [vmem:[#allocation2 + $0x28] sm:$0xff] %v1129_v33 }
 0x1d9   :  { %v1086_v35 = vpop.f32.mrf.mxu3  ;;  %v1099_v36 = vpop.f32.mrf.mxu0 }
 0x1da   :  { %v1087_v37 = vadd.f32 %v1086_v35, %v337_v34 }
 0x1dc   :  { %v1100_v38 = vadd.f32 %v1099_v36, %v1087_v37 }
 0x1de   :  { %v1109_v39 = vmul.f32 0.5, %v1100_v38 }
 0x1e0   :  { %1815 = vtanh.f32 %v1109_v39 }
 0x1e1   :  { %v1088_v10 = vpop.f32.mrf.mxu3  ;;  %v1101_v40 = vpop.f32.mrf.mxu0 }
 0x1e6   :  { %v1816_v31 = vpop.eup %1815 }
 0x1e7   :  { %v1123_v41 = vmul.f32 0.5, %v1816_v31 }
 0x1e9   :  { %v1130_v42 = vadd.f32 0.5, %v1123_v41 }
 0x1eb   :  { %1138 = vst.msk [vmem:[#allocation2 + $0x30] sm:$0xff] %vm1137_vm2, %v1130_v42 }
 0x1ec   :  { %1149 = dma.vmem_to_hbm [thread:$0]  %s1145_s6, 896, %s1147_s15, [#allocation3]  }
 0x1ed   :  { %1841 = dma.done.wait [#allocation3], 896  }
 0x1ee   :  { %1842 = vsyncadd [#allocation3], 4294966400 }
 0x1ef   :  { %1154 = vsyncpa [#allocation3], 1 }

</bundles_post_ra>
